<compile_context>
chip_gen: v7x
topology: tpu7x:2x2x1
jax: 0.10.0
libtpu: 0.0.40
codegen_flags: <defaults>
</compile_context>

<pallas_src>
import jax
import jax.numpy as jnp
from jax.experimental import pallas as pl
from jax.experimental.pallas import tpu as pltpu

PACK = 2  # images packed along the lane axis per grid step


def fused_residual_block_kernel(x_ref, w1_ref, b1_ref, w2_ref, b2_ref,
                                out_ref, pad_ref):
    # x_ref   : (1, H, WCP)    PACK images packed along lanes (lane = img*W*C + w*C + c)
    # w*_ref  : (3*WCP, WCP)   bf16 banded weights, the 3 kh bands stacked along K
    # b*_ref  : (1, WCP)       f32 bias tiled across (img, w)
    # out_ref : (1, H, WCP)
    # pad_ref : VMEM scratch (H+2, WCP) f32 — H-padded staging buffer shared by both convs
    H = out_ref.shape[1]
    wcp = out_ref.shape[2]

    # Zero ONLY the two halo rows (the interior is fully overwritten below).  Done every
    # grid step — never gate this on program_id(0)==0: under "parallel" megacore sharding
    # the second core never executes program 0, and scratch starts uninitialized anyway.
    zero_row = jnp.zeros((1, wcp), jnp.float32)
    pad_ref[pl.ds(0, 1), :] = zero_row
    pad_ref[pl.ds(H + 1, 1), :] = zero_row

    # Stage the input once into the interior rows (halo rows stay zero).
    pad_ref[pl.ds(1, H), :] = x_ref[0].astype(jnp.float32)

    def conv3x3(w_ref, b_ref):
        # One fat MXU contraction: stack the three H-shifted slabs along lanes (K = 3*WCP)
        # against the pre-stacked banded weights.  bf16 operands, f32 accumulation.
        lhs = jnp.concatenate(
            [pad_ref[pl.ds(kh, H), :].astype(jnp.bfloat16) for kh in range(3)],
            axis=-1)                                                # (H, 3*WCP) bf16
        acc = jnp.dot(lhs, w_ref[...], preferred_element_type=jnp.float32)
        return acc + b_ref[...].astype(jnp.float32)                 # (H, WCP) f32

    y1 = jnp.maximum(conv3x3(w1_ref, b1_ref), 0.0)   # conv1 + ReLU (never leaves VMEM)
    pad_ref[pl.ds(1, H), :] = y1                     # halo rows are still zero
    y2 = conv3x3(w2_ref, b2_ref)                     # conv2

    # Re-read x for the residual (input tile is still resident in VMEM) instead of
    # holding the slab live across both convolutions.
    x_res = x_ref[0].astype(jnp.float32)
    out_ref[0] = jnp.maximum(y2 + x_res, 0.0).astype(out_ref.dtype)


def _stacked_banded_weights(w_hwio, W, pack):
    """(3, 3, C, C) HWIO -> (3*pack*W*C, pack*W*C) bf16 stacked banded matrices.

    Per kh: B[kh][win*C + ci, w*C + co] = w[kh, kw, ci, co] with win = w + kw - 1;
    out-of-range win are dropped (implements the width zero-padding).  The per-image
    band is replicated block-diagonally for the `pack` lane-packed images, and the 3
    kh bands are stacked along K to match the in-kernel lane-stacked LHS.
    """
    C = w_hwio.shape[2]
    wc = W * C
    mats = []
    for kh in range(3):
        m = jnp.zeros((wc, wc), jnp.float32)
        for kw in range(3):
            shift_eye = jnp.eye(W, W, 1 - kw, dtype=jnp.float32)
            m = m + jnp.kron(shift_eye, w_hwio[kh, kw].astype(jnp.float32))
        mats.append(jnp.kron(jnp.eye(pack, dtype=jnp.float32), m))
    return jnp.concatenate(mats, axis=0).astype(jnp.bfloat16)


def residual_block_forward_nhwc(x_nhwc, w1_hwio, b1, w2_hwio, b2):
    """ReLU(x + conv2(ReLU(conv1(x)))), 3x3 'same' convs, NHWC activations / HWIO weights."""
    N, H, W, C = x_nhwc.shape
    wc = W * C
    pack = PACK

    # Pad batch to a multiple of `pack` (zero images; sliced off at the end).
    Np = ((N + pack - 1) // pack) * pack
    if Np != N:
        x_nhwc = jnp.concatenate(
            [x_nhwc, jnp.zeros((Np - N, H, W, C), x_nhwc.dtype)], axis=0)
    n_steps = Np // pack
    wcp = pack * wc

    # Lane packing: (pair, member, H, W*C) -> (pair, H, member*W*C); lane order (img, w, c).
    xp = (x_nhwc.reshape(n_steps, pack, H, wc)
                .transpose(0, 2, 1, 3)
                .reshape(n_steps, H, wcp))

    w1s = _stacked_banded_weights(w1_hwio, W, pack)   # (3*wcp, wcp) bf16
    w2s = _stacked_banded_weights(w2_hwio, W, pack)
    b1t = jnp.tile(b1, pack * W).reshape(1, wcp).astype(jnp.float32)
    b2t = jnp.tile(b2, pack * W).reshape(1, wcp).astype(jnp.float32)

    # Note (v7x): with N=2 and pack=2 the grid is a single step, so one TensorCore idles;
    # for larger batches the grid is N/2 "parallel" steps and both cores are busy.
    out = pl.pallas_call(
        fused_residual_block_kernel,
        out_shape=jax.ShapeDtypeStruct((n_steps, H, wcp), x_nhwc.dtype),
        grid_spec=pltpu.PrefetchScalarGridSpec(
            num_scalar_prefetch=0,
            grid=(n_steps,),
            in_specs=[
                pl.BlockSpec((1, H, wcp), lambda n: (n, 0, 0)),
                pl.BlockSpec((3 * wcp, wcp), lambda n: (0, 0)),   # weights stay resident
                pl.BlockSpec((1, wcp), lambda n: (0, 0)),
                pl.BlockSpec((3 * wcp, wcp), lambda n: (0, 0)),
                pl.BlockSpec((1, wcp), lambda n: (0, 0)),
            ],
            out_specs=pl.BlockSpec((1, H, wcp), lambda n: (n, 0, 0)),
            scratch_shapes=[pltpu.VMEM((H + 2, wcp), jnp.float32)],
        ),
        compiler_params=pltpu.CompilerParams(
            dimension_semantics=("parallel",),
            vmem_limit_bytes=32 * 1024 * 1024,
        ),
    )(xp, w1s, b1t, w2s, b2t)

    out = (out.reshape(n_steps, H, pack, wc)
              .transpose(0, 2, 1, 3)
              .reshape(Np, H, W, C))
    return out[:N]


def residual_block_forward_nchw(x_nchw, w1_oihw, b1, w2_oihw, b2):
    """PyTorch-convention entry point (NCHW input, OIHW weights)."""
    x_nhwc = jnp.transpose(x_nchw, (0, 2, 3, 1))
    w1_hwio = jnp.transpose(w1_oihw, (2, 3, 1, 0))
    w2_hwio = jnp.transpose(w2_oihw, (2, 3, 1, 0))
    out_nhwc = residual_block_forward_nhwc(x_nhwc, w1_hwio, b1, w2_hwio, b2)
    return jnp.transpose(out_nhwc, (0, 3, 1, 2))


def _conv_nchw(inp, w, b):
    y = jax.lax.conv_general_dilated(
        inp, w, window_strides=(1, 1), padding="SAME",
        dimension_numbers=("NCHW", "OIHW", "NCHW"),
        precision=jax.lax.Precision.HIGHEST)
    return y + b[None, :, None, None]


def _reference_nchw(x, w1, b1, w2, b2):
    """Pure-JAX f32 reference matching torch semantics (NCHW / OIHW, padding=1)."""
    y = jax.nn.relu(_conv_nchw(x, w1, b1))
    y = _conv_nchw(y, w2, b2)
    return jax.nn.relu(x + y)


def _reference_nchw_bf16_matched(x, w1, b1, w2, b2):
    """Reference with conv operands rounded to bf16 (matches kernel's MXU precision)."""
    rd = lambda a: a.astype(jnp.bfloat16).astype(jnp.float32)
    y = jax.nn.relu(_conv_nchw(rd(x), rd(w1), b1))
    y = _conv_nchw(rd(y), rd(w2), b2)
    return jax.nn.relu(x + y)


if __name__ == "__main__":
    N, C, H, W = 2, 4, 16, 16  # small shapes consistent with ResidualBlock(channels=4)

    key = jax.random.PRNGKey(0)
    kx, kw1, kb1, kw2, kb2 = jax.random.split(key, 5)

    x_nchw = jax.random.normal(kx, (N, C, H, W), dtype=jnp.float32)
    # Synthetic params with PyTorch Conv2d shapes: (C_out, C_in, 3, 3) and (C_out,).
    fan_in = C * 3 * 3
    bound = 1.0 / (fan_in ** 0.5)
    w1_oihw = jax.random.uniform(kw1, (C, C, 3, 3), jnp.float32, -bound, bound)
    b1 = jax.random.uniform(kb1, (C,), jnp.float32, -bound, bound)
    w2_oihw = jax.random.uniform(kw2, (C, C, 3, 3), jnp.float32, -bound, bound)
    b2 = jax.random.uniform(kb2, (C,), jnp.float32, -bound, bound)

    fwd = jax.jit(residual_block_forward_nchw)
    out = jax.block_until_ready(fwd(x_nchw, w1_oihw, b1, w2_oihw, b2))

    assert out.shape == (N, C, H, W) and out.dtype == jnp.float32

    # Tight check against a reference that matches the kernel's bf16 MXU operands.
    ref_bf16 = _reference_nchw_bf16_matched(x_nchw, w1_oihw, b1, w2_oihw, b2)
    assert jnp.allclose(out, ref_bf16, atol=2e-3, rtol=2e-3), "mismatch vs bf16-matched ref"

    # Loose check against the exact f32 PyTorch-semantics reference (bf16 matmul operands).
    ref_f32 = _reference_nchw(x_nchw, w1_oihw, b1, w2_oihw, b2)
    assert jnp.allclose(out, ref_f32, atol=3e-2, rtol=3e-2), "mismatch vs f32 reference"

    print("KERNEL_OK")
</pallas_src>

<mosaic_0001>
module attributes {stable_mosaic.version = 11 : i64} {
  func.func @fused_residual_block_kernel(%arg0: i32, %arg1: memref<1x16x128xf32, #tpu.memory_space<vmem>>, %arg2: memref<384x128xbf16, #tpu.memory_space<vmem>>, %arg3: memref<1x128xf32, #tpu.memory_space<vmem>>, %arg4: memref<384x128xbf16, #tpu.memory_space<vmem>>, %arg5: memref<1x128xf32, #tpu.memory_space<vmem>>, %arg6: memref<1x16x128xf32, #tpu.memory_space<vmem>>, %arg7: memref<18x128xf32, #tpu.memory_space<vmem>>) attributes {dimension_semantics = [#tpu.dimension_semantics<parallel>], iteration_bounds = array<i64: 1>, scalar_prefetch = 0 : i64, scratch_operands = 1 : i64, tpu.core_type = #tpu.core_type<tc>, window_params = [{transform_indices = @transform_0, window_bounds = array<i64: 1, 16, 128>}, {pipeline_mode = #tpu.pipeline_mode<synchronous>, transform_indices = @transform_1, window_bounds = array<i64: 384, 128>}, {pipeline_mode = #tpu.pipeline_mode<synchronous>, transform_indices = @transform_2, window_bounds = array<i64: 1, 128>}, {pipeline_mode = #tpu.pipeline_mode<synchronous>, transform_indices = @transform_3, window_bounds = array<i64: 384, 128>}, {pipeline_mode = #tpu.pipeline_mode<synchronous>, transform_indices = @transform_4, window_bounds = array<i64: 1, 128>}, {transform_indices = @transform_5, window_bounds = array<i64: 1, 16, 128>}]} {
    %cst = arith.constant 0.000000e+00 : f32
    %0 = vector.broadcast %cst : f32 to vector<1x128xf32>
    %c0 = arith.constant 0 : index
    %c0_0 = arith.constant 0 : index
    %1 = vector.load %arg7[%c0, %c0_0] : memref<18x128xf32, #tpu.memory_space<vmem>>, vector<1x128xf32>
    tpu.vector_store %arg7[%c0, %c0_0], %0 {strides = array<i32>} : memref<18x128xf32, #tpu.memory_space<vmem>>, vector<1x128xf32>,
    %c17 = arith.constant 17 : index
    %c0_1 = arith.constant 0 : index
    %2 = vector.load %arg7[%c17, %c0_1] : memref<18x128xf32, #tpu.memory_space<vmem>>, vector<1x128xf32>
    tpu.vector_store %arg7[%c17, %c0_1], %0 {strides = array<i32>} : memref<18x128xf32, #tpu.memory_space<vmem>>, vector<1x128xf32>,
    %c0_2 = arith.constant 0 : index
    %c0_3 = arith.constant 0 : index
    %c0_4 = arith.constant 0 : index
    %3 = vector.load %arg1[%c0_2, %c0_3, %c0_4] : memref<1x16x128xf32, #tpu.memory_space<vmem>>, vector<1x16x128xf32>
    %4 = vector.shape_cast %3 : vector<1x16x128xf32> to vector<16x128xf32>
    %c1 = arith.constant 1 : index
    %c0_5 = arith.constant 0 : index
    %5 = vector.load %arg7[%c1, %c0_5] : memref<18x128xf32, #tpu.memory_space<vmem>>, vector<16x128xf32>
    tpu.vector_store %arg7[%c1, %c0_5], %4 {strides = array<i32>} : memref<18x128xf32, #tpu.memory_space<vmem>>, vector<16x128xf32>,
    %c0_6 = arith.constant 0 : index
    %c0_7 = arith.constant 0 : index
    %6 = vector.load %arg7[%c0_6, %c0_7] : memref<18x128xf32, #tpu.memory_space<vmem>>, vector<16x128xf32>
    %7 = arith.truncf %6 : vector<16x128xf32> to vector<16x128xbf16>
    %c1_8 = arith.constant 1 : index
    %c0_9 = arith.constant 0 : index
    %8 = vector.load %arg7[%c1_8, %c0_9] : memref<18x128xf32, #tpu.memory_space<vmem>>, vector<16x128xf32>
    %9 = arith.truncf %8 : vector<16x128xf32> to vector<16x128xbf16>
    %c2 = arith.constant 2 : index
    %c0_10 = arith.constant 0 : index
    %10 = vector.load %arg7[%c2, %c0_10] : memref<18x128xf32, #tpu.memory_space<vmem>>, vector<16x128xf32>
    %11 = arith.truncf %10 : vector<16x128xf32> to vector<16x128xbf16>
    %12 = tpu.concatenate %7, %9, %11 in 1 : vector<16x128xbf16>, vector<16x128xbf16>, vector<16x128xbf16> -> vector<16x384xbf16>
    %c0_11 = arith.constant 0 : index
    %c0_12 = arith.constant 0 : index
    %13 = vector.load %arg2[%c0_11, %c0_12] : memref<384x128xbf16, #tpu.memory_space<vmem>>, vector<384x128xbf16>
    %cst_13 = arith.constant dense<0.000000e+00> : vector<16x128xf32>
    %14 = tpu.matmul %12, %13, %cst_13 {dimension_numbers = #tpu.dot_dimension_numbers<[1], [0], [0], [1], [0, 0, 1, 1], [], []>} : vector<16x384xbf16>, vector<384x128xbf16>, vector<16x128xf32> -> vector<16x128xf32>
    %c0_14 = arith.constant 0 : index
    %c0_15 = arith.constant 0 : index
    %15 = vector.load %arg3[%c0_14, %c0_15] : memref<1x128xf32, #tpu.memory_space<vmem>>, vector<1x128xf32>
    %16 = vector.broadcast %15 : vector<1x128xf32> to vector<16x128xf32>
    %17 = arith.addf %14, %16 : vector<16x128xf32>
    %cst_16 = arith.constant 0.000000e+00 : f32
    %18 = vector.broadcast %cst_16 : f32 to vector<16x128xf32>
    %19 = arith.maximumf %17, %18 : vector<16x128xf32>
    %c1_17 = arith.constant 1 : index
    %c0_18 = arith.constant 0 : index
    %20 = vector.load %arg7[%c1_17, %c0_18] : memref<18x128xf32, #tpu.memory_space<vmem>>, vector<16x128xf32>
    tpu.vector_store %arg7[%c1_17, %c0_18], %19 {strides = array<i32>} : memref<18x128xf32, #tpu.memory_space<vmem>>, vector<16x128xf32>,
    %c0_19 = arith.constant 0 : index
    %c0_20 = arith.constant 0 : index
    %21 = vector.load %arg7[%c0_19, %c0_20] : memref<18x128xf32, #tpu.memory_space<vmem>>, vector<16x128xf32>
    %22 = arith.truncf %21 : vector<16x128xf32> to vector<16x128xbf16>
    %c1_21 = arith.constant 1 : index
    %c0_22 = arith.constant 0 : index
    %23 = vector.load %arg7[%c1_21, %c0_22] : memref<18x128xf32, #tpu.memory_space<vmem>>, vector<16x128xf32>
    %24 = arith.truncf %23 : vector<16x128xf32> to vector<16x128xbf16>
    %c2_23 = arith.constant 2 : index
    %c0_24 = arith.constant 0 : index
    %25 = vector.load %arg7[%c2_23, %c0_24] : memref<18x128xf32, #tpu.memory_space<vmem>>, vector<16x128xf32>
    %26 = arith.truncf %25 : vector<16x128xf32> to vector<16x128xbf16>
    %27 = tpu.concatenate %22, %24, %26 in 1 : vector<16x128xbf16>, vector<16x128xbf16>, vector<16x128xbf16> -> vector<16x384xbf16>
    %c0_25 = arith.constant 0 : index
    %c0_26 = arith.constant 0 : index
    %28 = vector.load %arg4[%c0_25, %c0_26] : memref<384x128xbf16, #tpu.memory_space<vmem>>, vector<384x128xbf16>
    %cst_27 = arith.constant dense<0.000000e+00> : vector<16x128xf32>
    %29 = tpu.matmul %27, %28, %cst_27 {dimension_numbers = #tpu.dot_dimension_numbers<[1], [0], [0], [1], [0, 0, 1, 1], [], []>} : vector<16x384xbf16>, vector<384x128xbf16>, vector<16x128xf32> -> vector<16x128xf32>
    %c0_28 = arith.constant 0 : index
    %c0_29 = arith.constant 0 : index
    %30 = vector.load %arg5[%c0_28, %c0_29] : memref<1x128xf32, #tpu.memory_space<vmem>>, vector<1x128xf32>
    %31 = vector.broadcast %30 : vector<1x128xf32> to vector<16x128xf32>
    %32 = arith.addf %29, %31 : vector<16x128xf32>
    %c0_30 = arith.constant 0 : index
    %c0_31 = arith.constant 0 : index
    %c0_32 = arith.constant 0 : index
    %33 = vector.load %arg1[%c0_30, %c0_31, %c0_32] : memref<1x16x128xf32, #tpu.memory_space<vmem>>, vector<1x16x128xf32>
    %34 = vector.shape_cast %33 : vector<1x16x128xf32> to vector<16x128xf32>
    %35 = arith.addf %32, %34 : vector<16x128xf32>
    %cst_33 = arith.constant 0.000000e+00 : f32
    %36 = vector.broadcast %cst_33 : f32 to vector<16x128xf32>
    %37 = arith.maximumf %35, %36 : vector<16x128xf32>
    %c0_34 = arith.constant 0 : index
    %c0_35 = arith.constant 0 : index
    %c0_36 = arith.constant 0 : index
    %38 = vector.load %arg6[%c0_34, %c0_35, %c0_36] : memref<1x16x128xf32, #tpu.memory_space<vmem>>, vector<1x16x128xf32>
    %39 = vector.shape_cast %38 : vector<1x16x128xf32> to vector<16x128xf32>
    %40 = vector.shape_cast %37 : vector<16x128xf32> to vector<1x16x128xf32>
    tpu.vector_store %arg6[%c0_34, %c0_35, %c0_36], %40 {strides = array<i32>} : memref<1x16x128xf32, #tpu.memory_space<vmem>>, vector<1x16x128xf32>,
    return
  }
  func.func @transform_0(%arg0: i32) -> (i32, i32, i32) {
    %c0_i32 = arith.constant 0 : i32
    %c0_i32_0 = arith.constant 0 : i32
    %c0_i32_1 = arith.constant 0 : i32
    return %arg0, %c0_i32, %c0_i32_0 : i32, i32, i32
  }
  func.func @transform_1(%arg0: i32) -> (i32, i32) {
    %c0_i32 = arith.constant 0 : i32
    %c0_i32_0 = arith.constant 0 : i32
    %c0_i32_1 = arith.constant 0 : i32
    return %c0_i32, %c0_i32_0 : i32, i32
  }
  func.func @transform_2(%arg0: i32) -> (i32, i32) {
    %c0_i32 = arith.constant 0 : i32
    %c0_i32_0 = arith.constant 0 : i32
    %c0_i32_1 = arith.constant 0 : i32
    return %c0_i32, %c0_i32_0 : i32, i32
  }
  func.func @transform_3(%arg0: i32) -> (i32, i32) {
    %c0_i32 = arith.constant 0 : i32
    %c0_i32_0 = arith.constant 0 : i32
    %c0_i32_1 = arith.constant 0 : i32
    return %c0_i32, %c0_i32_0 : i32, i32
  }
  func.func @transform_4(%arg0: i32) -> (i32, i32) {
    %c0_i32 = arith.constant 0 : i32
    %c0_i32_0 = arith.constant 0 : i32
    %c0_i32_1 = arith.constant 0 : i32
    return %c0_i32, %c0_i32_0 : i32, i32
  }
  func.func @transform_5(%arg0: i32) -> (i32, i32, i32) {
    %c0_i32 = arith.constant 0 : i32
    %c0_i32_0 = arith.constant 0 : i32
    %c0_i32_1 = arith.constant 0 : i32
    return %arg0, %c0_i32, %c0_i32_0 : i32, i32, i32
  }
}

</mosaic_0001>

<bundles_post_ra>
// kernel: tile.13
= control target key start
LH: loop header
LB: loop body
LE: loop exit
PB: predicated region body
PF: predicated region fallthrough
CT: control target
= control target key end

     0   :  { %s40_s0 = inlined_call_operand.vmem [shape: f32[4], index: 0, kind: input, shape index: {}]   ;;  %s41_s1 = inlined_call_operand.vmem [shape: f32[32,4], index: 1, kind: output, shape index: {}]  }
   0x1   :  { %v4_v0 = vld [vmem:[%s40_s0] ss:$0 sm:$0xff] }
   0x2   :  { %5 = vst [vmem:[%s41_s1] sm:$0xff] %v4_v0  ;;  %12 = vst [vmem:[%s41_s1 + $0x8] sm:$0xff] %v4_v0 }
   0x3   :  { %13 = vst [vmem:[%s41_s1 + $0x10] sm:$0xff] %v4_v0  ;;  %14 = vst [vmem:[%s41_s1 + $0x18] sm:$0xff] %v4_v0 }

// kernel: tile.14
= control target key start
LH: loop header
LB: loop body
LE: loop exit
PB: predicated region body
PF: predicated region fallthrough
CT: control target
= control target key end

     0   :  { %s259_s10 = smov 124   ;;  %s260_s11 = smov 116   ;;  %vm3_vm0 = vcmask 31744   ;;  %vm9_vm1 = vcmask 1048544   ;;  %vm15_vm2 = vcmask 1015744   ;;  %vm21_vm3 = vcmask 982944   ;;  %s399_s0 = inlined_call_operand.vmem [shape: f32[32,4], index: 0, kind: input, shape index: {}]   ;;  %s400_s1 = inlined_call_operand.vmem [shape: f32[1,128], index: 1, kind: output, shape index: {}]  }
   0x1   :  { %v197_v0 = vld [vmem:[%s399_s0 + $0x1f] sm:$0x1]   ;;  %v199_v1 = vld [vmem:[%s399_s0 + $0x1d] sm:$0x1]   ;;  %v198_v2 = vld [vmem:[%s399_s0 + $0x1e] sm:$0x1]  }
   0x2   :  { %7 = vrot.lane.b32.xlu0 %v197_v0, %s259_s10  ;;  %19 = vrot.lane.b32.xlu1 %v199_v1, %s260_s11  ;;  %v200_v3 = vld [vmem:[%s399_s0 + $0x1c] sm:$0x1]   ;;  %s261_s16 = smov 120   ;;  %s262_s17 = smov 112   ;;  %v201_v4 = vld [vmem:[%s399_s0 + $0x1b] sm:$0x1]  }
   0x3   :  { %v202_v5 = vld [vmem:[%s399_s0 + $0x1a] sm:$0x1]   ;;  %s263_s22 = smov 108   ;;  %s264_s23 = smov 104   ;;  %v203_v6 = vld [vmem:[%s399_s0 + $0x19] sm:$0x1]  }
   0x4   :  { %v204_v7 = vld [vmem:[%s399_s0 + $0x18] sm:$0x1]   ;;  %s265_s28 = smov 100   ;;  %s266_s29 = smov 96   ;;  %v205_v8 = vld [vmem:[%s399_s0 + $0x17] sm:$0x1]  }
   0x5   :  { %v206_v9 = vld [vmem:[%s399_s0 + $0x16] sm:$0x1]   ;;  %v2_v10 = vld [vmem:[%s399_s0] sm:$0x1]   ;;  %s267_s7 = smov 92   ;;  %s268_s8 = smov 88  }
   0x6   :  { %13 = vrot.lane.b32.xlu0 %v198_v2, %s261_s16  ;;  %25 = vrot.lane.b32.xlu1 %v200_v3, %s262_s17  ;;  %4 = vst.msk [vmem:[#allocation0] sm:$0x1] %vm3_vm0, %v2_v10   ;;  %v207_v11 = vld [vmem:[%s399_s0 + $0x15] sm:$0x1]   ;;  %v208_v12 = vld [vmem:[%s399_s0 + $0x14] sm:$0x1]  }
   0x7   :  { %s269_s13 = smov 84   ;;  %s270_s14 = smov 80   ;;  %v209_v13 = vld [vmem:[%s399_s0 + $0x13] sm:$0x1]   ;;  %v210_v14 = vld [vmem:[%s399_s0 + $0x12] sm:$0x1]  }
   0x8   :  { %s271_s19 = smov 76   ;;  %s272_s20 = smov 72   ;;  %v211_v15 = vld [vmem:[%s399_s0 + $0x11] sm:$0x1]   ;;  %v212_v16 = vld [vmem:[%s399_s0 + $0x10] sm:$0x1]  }
   0x9   :  { %s273_s25 = smov 68   ;;  %s274_s26 = smov 64   ;;  %v213_v17 = vld [vmem:[%s399_s0 + $0xf] sm:$0x1]   ;;  %v214_v18 = vld [vmem:[%s399_s0 + $0xe] sm:$0x1]  }
   0xa   :  { %31 = vrot.lane.b32.xlu0 %v201_v4, %s263_s22  ;;  %37 = vrot.lane.b32.xlu1 %v202_v5, %s264_s23  ;;  %s275_s2 = smov 60   ;;  %s276_s3 = smov 56   ;;  %v215_v19 = vld [vmem:[%s399_s0 + $0xd] sm:$0x1]   ;;  %v216_v20 = vld [vmem:[%s399_s0 + $0xc] sm:$0x1]  }
   0xb   :  { %s278_s9 = smov 48   ;;  %v217_v21 = vld [vmem:[%s399_s0 + $0xb] sm:$0x1]   ;;  %v218_v22 = vld [vmem:[%s399_s0 + $0xa] sm:$0x1]   ;;  %s280_s15 = smov 40  }
   0xc   :  { %v219_v23 = vld [vmem:[%s399_s0 + $0x9] sm:$0x1]   ;;  %v220_v24 = vld [vmem:[%s399_s0 + $0x8] sm:$0x1]   ;;  %s282_s21 = smov 32   ;;  %s284_s27 = smov 24  }
   0xd   :  { %v221_v25 = vld [vmem:[%s399_s0 + $0x7] sm:$0x1]   ;;  %v222_v26 = vld [vmem:[%s399_s0 + $0x6] sm:$0x1]   ;;  %v223_v27 = vld [vmem:[%s399_s0 + $0x5] sm:$0x1]  }
   0xe   :  { %43 = vrot.lane.b32.xlu0 %v203_v6, %s265_s28  ;;  %49 = vrot.lane.b32.xlu1 %v204_v7, %s266_s29  ;;  %v224_v28 = vld [vmem:[%s399_s0 + $0x4] sm:$0x1]   ;;  %s286_s4 = smov 16   ;;  %v225_v29 = vld [vmem:[%s399_s0 + $0x3] sm:$0x1]   ;;  %s288_s10 = smov 8  }
   0xf   :  { %v226_v30 = vld [vmem:[%s399_s0 + $0x2] sm:$0x1]   ;;  %v227_v31 = vld [vmem:[%s399_s0 + $0x1] sm:$0x1]   ;;  %s289_s0 = smov 4   ;;  %vm27_vm4 = vcmask 950144  }
  0x10   :  { %vm33_vm5 = vcmask 917344   ;;  %vm39_vm6 = vcmask 884544   ;;  %vm45_vm7 = vcmask 851744   ;;  %vm51_vm8 = vcmask 818944  }
  0x11   :  { %vm57_vm9 = vcmask 786144   ;;  %vm63_vm10 = vcmask 753344   ;;  %vm69_vm11 = vcmask 720544   ;;  %vm75_vm12 = vcmask 687744  }
  0x12   :  { %55 = vrot.lane.b32.xlu0 %v205_v8, %s267_s7  ;;  %61 = vrot.lane.b32.xlu1 %v206_v9, %s268_s8  ;;  %s277_s8 = smov 52   ;;  %vm81_vm13 = vcmask 654944   ;;  %vm87_vm14 = vcmask 622144   ;;  %vm93_vm15 = vcmask 589344   ;;  %vm99_vm0 = vcmask 556544  }
  0x16   :  { %67 = vrot.lane.b32.xlu0 %v207_v11, %s269_s13  ;;  %73 = vrot.lane.b32.xlu1 %v208_v12, %s270_s14  ;;  %s279_s14 = smov 44  }
  0x1a   :  { %79 = vrot.lane.b32.xlu0 %v209_v13, %s271_s19  ;;  %85 = vrot.lane.b32.xlu1 %v210_v14, %s272_s20  ;;  %s281_s20 = smov 36  }
  0x1e   :  { %91 = vrot.lane.b32.xlu0 %v211_v15, %s273_s25  ;;  %97 = vrot.lane.b32.xlu1 %v212_v16, %s274_s26  ;;  %s283_s26 = smov 28  }
  0x22   :  { %103 = vrot.lane.b32.xlu0 %v213_v17, %s275_s2  ;;  %109 = vrot.lane.b32.xlu1 %v214_v18, %s276_s3  ;;  %s285_s3 = smov 20  }
  0x26   :  { %115 = vrot.lane.b32.xlu0 %v215_v19, %s277_s8  ;;  %121 = vrot.lane.b32.xlu1 %v216_v20, %s278_s9  ;;  %s287_s9 = smov 12  }
  0x2a   :  { %127 = vrot.lane.b32.xlu0 %v217_v21, %s279_s14  ;;  %133 = vrot.lane.b32.xlu1 %v218_v22, %s280_s15 }
  0x2e   :  { %139 = vrot.lane.b32.xlu0 %v219_v23, %s281_s20  ;;  %145 = vrot.lane.b32.xlu1 %v220_v24, %s282_s21 }
  0x32   :  { %151 = vrot.lane.b32.xlu0 %v221_v25, %s283_s26  ;;  %157 = vrot.lane.b32.xlu1 %v222_v26, %s284_s27 }
  0x36   :  { %163 = vrot.lane.b32.xlu0 %v223_v27, %s285_s3  ;;  %169 = vrot.lane.b32.xlu1 %v224_v28, %s286_s4 }
  0x3a   :  { %175 = vrot.lane.b32.xlu0 %v225_v29, %s287_s9  ;;  %181 = vrot.lane.b32.xlu1 %v226_v30, %s288_s10 }
  0x3e   :  { %187 = vrot.lane.b32.xlu0 %v227_v31, %s289_s0 }
  0x74   :  { %v8_v32 = vpop.permute.xlu0 %7   ;;  %v20_v33 = vpop.permute.xlu1 %19  }
  0x75   :  { %10 = vst.msk [vmem:[#allocation0] sm:$0x1] %vm9_vm1, %v8_v32   ;;  %vm105_vm1 = vcmask 523744  }
  0x78   :  { %v14_v34 = vpop.permute.xlu0 %13   ;;  %v26_v35 = vpop.permute.xlu1 %25  }
  0x79   :  { %16 = vst.msk [vmem:[#allocation0] sm:$0x1] %vm15_vm2, %v14_v34   ;;  %vm111_vm2 = vcmask 490944  }
  0x7a   :  { %22 = vst.msk [vmem:[#allocation0] sm:$0x1] %vm21_vm3, %v20_v33   ;;  %vm117_vm3 = vcmask 458144  }
  0x7b   :  { %28 = vst.msk [vmem:[#allocation0] sm:$0x1] %vm27_vm4, %v26_v35   ;;  %vm123_vm4 = vcmask 425344  }
  0x7c   :  { %v32_v36 = vpop.permute.xlu0 %31   ;;  %v38_v37 = vpop.permute.xlu1 %37  }
  0x7d   :  { %34 = vst.msk [vmem:[#allocation0] sm:$0x1] %vm33_vm5, %v32_v36   ;;  %vm129_vm5 = vcmask 392544  }
  0x7e   :  { %40 = vst.msk [vmem:[#allocation0] sm:$0x1] %vm39_vm6, %v38_v37   ;;  %vm135_vm6 = vcmask 359744  }
  0x80   :  { %v44_v38 = vpop.permute.xlu0 %43   ;;  %v50_v39 = vpop.permute.xlu1 %49  }
  0x81   :  { %46 = vst.msk [vmem:[#allocation0] sm:$0x1] %vm45_vm7, %v44_v38   ;;  %vm141_vm7 = vcmask 326944  }
  0x82   :  { %52 = vst.msk [vmem:[#allocation0] sm:$0x1] %vm51_vm8, %v50_v39   ;;  %vm147_vm8 = vcmask 294144  }
  0x84   :  { %v56_v40 = vpop.permute.xlu0 %55   ;;  %v62_v41 = vpop.permute.xlu1 %61  }
  0x85   :  { %58 = vst.msk [vmem:[#allocation0] sm:$0x1] %vm57_vm9, %v56_v40   ;;  %vm153_vm9 = vcmask 261344  }
  0x86   :  { %64 = vst.msk [vmem:[#allocation0] sm:$0x1] %vm63_vm10, %v62_v41   ;;  %vm159_vm10 = vcmask 228544  }
  0x88   :  { %v68_v42 = vpop.permute.xlu0 %67   ;;  %v74_v43 = vpop.permute.xlu1 %73  }
  0x89   :  { %70 = vst.msk [vmem:[#allocation0] sm:$0x1] %vm69_vm11, %v68_v42   ;;  %vm165_vm11 = vcmask 195744  }
  0x8a   :  { %76 = vst.msk [vmem:[#allocation0] sm:$0x1] %vm75_vm12, %v74_v43   ;;  %vm171_vm12 = vcmask 162944  }
  0x8c   :  { %v80_v44 = vpop.permute.xlu0 %79   ;;  %v86_v45 = vpop.permute.xlu1 %85  }
  0x8d   :  { %82 = vst.msk [vmem:[#allocation0] sm:$0x1] %vm81_vm13, %v80_v44   ;;  %vm177_vm13 = vcmask 130144  }
  0x8e   :  { %88 = vst.msk [vmem:[#allocation0] sm:$0x1] %vm87_vm14, %v86_v45   ;;  %vm183_vm14 = vcmask 97344  }
  0x90   :  { %v92_v46 = vpop.permute.xlu0 %91   ;;  %v98_v47 = vpop.permute.xlu1 %97  }
  0x91   :  { %94 = vst.msk [vmem:[#allocation0] sm:$0x1] %vm93_vm15, %v92_v46   ;;  %vm189_vm15 = vcmask 64544  }
  0x92   :  { %100 = vst.msk [vmem:[#allocation0] sm:$0x1] %vm99_vm0, %v98_v47  }
  0x94   :  { %v104_v48 = vpop.permute.xlu0 %103   ;;  %v110_v49 = vpop.permute.xlu1 %109  }
  0x95   :  { %106 = vst.msk [vmem:[#allocation0] sm:$0x1] %vm105_vm1, %v104_v48  }
  0x96   :  { %112 = vst.msk [vmem:[#allocation0] sm:$0x1] %vm111_vm2, %v110_v49  }
  0x98   :  { %v116_v50 = vpop.permute.xlu0 %115   ;;  %v122_v51 = vpop.permute.xlu1 %121  }
  0x99   :  { %118 = vst.msk [vmem:[#allocation0] sm:$0x1] %vm117_vm3, %v116_v50  }
  0x9a   :  { %124 = vst.msk [vmem:[#allocation0] sm:$0x1] %vm123_vm4, %v122_v51  }
  0x9c   :  { %v128_v52 = vpop.permute.xlu0 %127   ;;  %v134_v53 = vpop.permute.xlu1 %133  }
  0x9d   :  { %130 = vst.msk [vmem:[#allocation0] sm:$0x1] %vm129_vm5, %v128_v52  }
  0x9e   :  { %136 = vst.msk [vmem:[#allocation0] sm:$0x1] %vm135_vm6, %v134_v53  }
  0xa0   :  { %v140_v54 = vpop.permute.xlu0 %139   ;;  %v146_v55 = vpop.permute.xlu1 %145  }
  0xa1   :  { %142 = vst.msk [vmem:[#allocation0] sm:$0x1] %vm141_vm7, %v140_v54  }
  0xa2   :  { %148 = vst.msk [vmem:[#allocation0] sm:$0x1] %vm147_vm8, %v146_v55  }
  0xa4   :  { %v152_v56 = vpop.permute.xlu0 %151   ;;  %v158_v57 = vpop.permute.xlu1 %157  }
  0xa5   :  { %154 = vst.msk [vmem:[#allocation0] sm:$0x1] %vm153_vm9, %v152_v56  }
  0xa6   :  { %160 = vst.msk [vmem:[#allocation0] sm:$0x1] %vm159_vm10, %v158_v57  }
  0xa8   :  { %v164_v58 = vpop.permute.xlu0 %163   ;;  %v170_v59 = vpop.permute.xlu1 %169  }
  0xa9   :  { %166 = vst.msk [vmem:[#allocation0] sm:$0x1] %vm165_vm11, %v164_v58  }
  0xaa   :  { %172 = vst.msk [vmem:[#allocation0] sm:$0x1] %vm171_vm12, %v170_v59  }
  0xac   :  { %v176_v60 = vpop.permute.xlu0 %175   ;;  %v182_v61 = vpop.permute.xlu1 %181  }
  0xad   :  { %178 = vst.msk [vmem:[#allocation0] sm:$0x1] %vm177_vm13, %v176_v60  }
  0xae   :  { %184 = vst.msk [vmem:[#allocation0] sm:$0x1] %vm183_vm14, %v182_v61  }
  0xb0   :  { %v188_v62 = vpop.permute.xlu0 %187  }
  0xb1   :  { %190 = vst.msk [vmem:[#allocation0] sm:$0x1] %vm189_vm15, %v188_v62  }
  0xb8   :  { %v194_v63 = vld [vmem:[#allocation0] sm:$0x1] }
  0xb9   :  { %196 = vst [vmem:[%s400_s1] sm:$0x1] %v194_v63 }

// kernel: residual_block_forward_nchw.1
= control target key start
LH: loop header
LB: loop body
LE: loop exit
PB: predicated region body
PF: predicated region fallthrough
CT: control target
= control target key end

     0   :  { %v825_v1 = vmov 0.0   ;;  %vm826_vm0 = vmmov 0   ;;  %s1051_s1 = inlined_call_operand.vmem [shape: bf16[384,128], index: 1, kind: input, shape index: {}]   ;;  %s1052_s0 = inlined_call_operand.vmem [shape: f32[1,16,128], index: 0, kind: input, shape index: {}]   ;;  %s1053_s3 = inlined_call_operand.vmem [shape: bf16[384,128], index: 3, kind: input, shape index: {}]   ;;  %s1054_s2 = inlined_call_operand.vmem [shape: f32[1,128], index: 2, kind: input, shape index: {}]   ;;  %s1055_s4 = inlined_call_operand.vmem [shape: f32[1,128], index: 4, kind: input, shape index: {}]   ;;  %s1056_s5 = inlined_call_operand.vmem [shape: f32[1,16,128], index: 5, kind: output, shape index: {}]  }
   0x1   :  { %v777_v0 = vld [vmem:[%s1051_s1 + $0x40] sm:$0xff]   ;;  %735 = vmatprep.subr.bf16.mxu1 %v825_v1  ;;  %21 = vst [vmem:[#allocation2] sm:$0x1] %v825_v1  ;;  %22 = vst [vmem:[#allocation2 + $0x11] sm:$0x1] %v825_v1  ;;  %751 = vmatprep.mubr.msk.bf16.mxu1 %vm826_vm0, %v825_v1  ;;  %v780_v4 = vld [vmem:[%s1051_s1 + $0x48] sm:$0xff]  }
   0x2   :  { %v778_v2 = vld [vmem:[%s1051_s1] sm:$0xff]   ;;  %673 = vmatprep.subr.bf16.mxu0 %v777_v0  ;;  %v781_v5 = vld [vmem:[%s1051_s1 + $0x8] sm:$0xff]   ;;  %v783_v7 = vld [vmem:[%s1051_s1 + $0x50] sm:$0xff]  }
   0x3   :  { %v779_v3 = vld [vmem:[%s1051_s1 + $0x80] sm:$0xff]   ;;  %674 = vmatpush3.bf16.msra.mxu0 %v778_v2  ;;  %v782_v6 = vld [vmem:[%s1051_s1 + $0x88] sm:$0xff]   ;;  %v784_v8 = vld [vmem:[%s1051_s1 + $0x10] sm:$0xff]  }
   0x4   :  { %736 = vmatpush3.bf16.msra.mxu1 %v779_v3  ;;  %675 = vmatprep.subr.bf16.mxu0 %v780_v4  ;;  %v785_v9 = vld [vmem:[%s1051_s1 + $0x90] sm:$0xff]   ;;  %v786_v10 = vld [vmem:[%s1051_s1 + $0x58] sm:$0xff]   ;;  %v789_v13 = vld [vmem:[%s1051_s1 + $0x60] sm:$0xff]  }
   0x5   :  { %737 = vmatprep.subr.bf16.mxu1 %v825_v1  ;;  %v787_v11 = vld [vmem:[%s1051_s1 + $0x18] sm:$0xff]   ;;  %v790_v14 = vld [vmem:[%s1051_s1 + $0x20] sm:$0xff]   ;;  %v792_v16 = vld [vmem:[%s1051_s1 + $0x68] sm:$0xff]  }
   0x6   :  { %v788_v12 = vld [vmem:[%s1051_s1 + $0x98] sm:$0xff]   ;;  %v791_v15 = vld [vmem:[%s1051_s1 + $0xa0] sm:$0xff]   ;;  %v793_v17 = vld [vmem:[%s1051_s1 + $0x28] sm:$0xff]  }
   0x7   :  { %676 = vmatpush3.bf16.msra.mxu0 %v781_v5  ;;  %v794_v18 = vld [vmem:[%s1051_s1 + $0xa8] sm:$0xff]   ;;  %v795_v19 = vld [vmem:[%s1051_s1 + $0x70] sm:$0xff]   ;;  %v933_v22 = vld [vmem:[%s1052_s0] sm:$0xff] }
   0x8   :  { %738 = vmatpush3.bf16.msra.mxu1 %v782_v6  ;;  %677 = vmatprep.subr.bf16.mxu0 %v783_v7  ;;  %v796_v20 = vld [vmem:[%s1051_s1 + $0x30] sm:$0xff]   ;;  %v938_v23 = vld [vmem:[%s1052_s0 + $0x8] sm:$0xff]  ;;  %v798_v24 = vld [vmem:[%s1051_s1 + $0x78] sm:$0xff]   ;;  %25 = vst [vmem:[#allocation2 + $0x1] sm:$0xff] %v933_v22 }
   0x9   :  { %739 = vmatprep.subr.bf16.mxu1 %v825_v1  ;;  %v797_v21 = vld [vmem:[%s1051_s1 + $0xb0] sm:$0xff]   ;;  %26 = vst [vmem:[#allocation2 + $0x9] sm:$0xff] %v938_v23  ;;  %v32_v25 = vpack.c.bf16 %v938_v23, %v933_v22  ;;  %v799_v26 = vld [vmem:[%s1051_s1 + $0x38] sm:$0xff]   ;;  %v801_v28 = vld [vmem:[%s1053_s3 + $0x40] sm:$0xff]  }
   0xa   :  { %v800_v27 = vld [vmem:[%s1051_s1 + $0xb8] sm:$0xff]   ;;  %v802_v29 = vld [vmem:[%s1053_s3 + $0x80] sm:$0xff]   ;;  %v804_v36 = vld [vmem:[%s1053_s3 + $0x48] sm:$0xff]  }
   0xb   :  { %678 = vmatpush3.bf16.msra.mxu0 %v784_v8  ;;  %267 = vmatprep.mubr.bf16.mxu0 %v32_v25  ;;  %v803_v30 = vld [vmem:[%s1053_s3] sm:$0xff]   ;;  %v806_v38 = vld [vmem:[%s1053_s3 + $0x8] sm:$0xff]   ;;  %v807_v40 = vld [vmem:[%s1053_s3 + $0x50] sm:$0xff]  }
   0xc   :  { %740 = vmatpush3.bf16.msra.mxu1 %v785_v9  ;;  %679 = vmatprep.subr.bf16.mxu0 %v786_v10  ;;  %v805_v39 = vld [vmem:[%s1053_s3 + $0x88] sm:$0xff]   ;;  %v808_v41 = vld [vmem:[%s1053_s3 + $0x90] sm:$0xff]   ;;  %v810_v43 = vld [vmem:[%s1053_s3 + $0x58] sm:$0xff]  }
   0xd   :  { %741 = vmatprep.subr.bf16.mxu1 %v825_v1  ;;  %v809_v42 = vld [vmem:[%s1053_s3 + $0x10] sm:$0xff]   ;;  %v811_v44 = vld [vmem:[%s1053_s3 + $0x98] sm:$0xff]   ;;  %v813_v46 = vld [vmem:[%s1053_s3 + $0x60] sm:$0xff]  }
   0xe   :  { %v812_v45 = vld [vmem:[%s1053_s3 + $0x18] sm:$0xff]   ;;  %v814_v47 = vld [vmem:[%s1053_s3 + $0xa0] sm:$0xff]   ;;  %v816_v49 = vld [vmem:[%s1053_s3 + $0x68] sm:$0xff]  }
   0xf   :  { %680 = vmatpush3.bf16.msra.mxu0 %v787_v11  ;;  %v27_v31 = vld [vmem:[#allocation2] sm:$0xff]  ;;  %v817_v50 = vld [vmem:[%s1053_s3 + $0xa8] sm:$0xff]   ;;  %v819_v52 = vld [vmem:[%s1053_s3 + $0x70] sm:$0xff]  }
  0x10   :  { %742 = vmatpush3.bf16.msra.mxu1 %v788_v12  ;;  %681 = vmatprep.subr.bf16.mxu0 %v789_v13  ;;  %v28_v32 = vld [vmem:[#allocation2 + $0x8] sm:$0xff]  ;;  %v815_v48 = vld [vmem:[%s1053_s3 + $0x20] sm:$0xff]   ;;  %v820_v53 = vld [vmem:[%s1053_s3 + $0xb0] sm:$0xff]  }
  0x11   :  { %743 = vmatprep.subr.bf16.mxu1 %v825_v1  ;;  %v33_v33 = vld [vmem:[#allocation2 + $0x2] sm:$0xff]  ;;  %v29_v34 = vpack.c.bf16 %v28_v32, %v27_v31  ;;  %v34_v35 = vld [vmem:[#allocation2 + $0xa] sm:$0xff]  ;;  %v822_v55 = vld [vmem:[%s1053_s3 + $0x78] sm:$0xff]  }
  0x12   :  { %v35_v37 = vpack.c.bf16 %v34_v35, %v33_v33  ;;  %v818_v51 = vld [vmem:[%s1053_s3 + $0x28] sm:$0xff]   ;;  %v821_v54 = vld [vmem:[%s1053_s3 + $0x30] sm:$0xff]   ;;  %v823_v56 = vld [vmem:[%s1053_s3 + $0xb8] sm:$0xff]  }
  0x13   :  { %682 = vmatpush3.bf16.msra.mxu0 %v790_v14  ;;  %v824_v57 = vld [vmem:[%s1053_s3 + $0x38] sm:$0xff]   ;;  %v623_v60 = vld [vmem:[%s1054_s2] ss:$0 sm:$0xff] }
  0x14   :  { %744 = vmatpush3.bf16.msra.mxu1 %v791_v15  ;;  %683 = vmatprep.subr.bf16.mxu0 %v792_v16 }
  0x15   :  { %745 = vmatprep.subr.bf16.mxu1 %v825_v1 }
  0x17   :  { %684 = vmatpush3.bf16.msra.mxu0 %v793_v17 }
  0x18   :  { %746 = vmatpush3.bf16.msra.mxu1 %v794_v18  ;;  %685 = vmatprep.subr.bf16.mxu0 %v795_v19 }
  0x19   :  { %747 = vmatprep.subr.bf16.mxu1 %v825_v1 }
  0x1b   :  { %686 = vmatpush3.bf16.msra.mxu0 %v796_v20 }
  0x1c   :  { %748 = vmatpush3.bf16.msra.mxu1 %v797_v21  ;;  %687 = vmatprep.subr.bf16.mxu0 %v798_v24  ;;  %v648_v21 = vld [vmem:[%s1055_s4] ss:$0 sm:$0xff] }
  0x1d   :  { %749 = vmatprep.subr.bf16.mxu1 %v825_v1 }
  0x1f   :  { %688 = vmatpush3.bf16.msra.mxu0 %v799_v26 }
  0x20   :  { %750 = vmatpush3.bf16.msra.mxu1 %v800_v27  ;;  %704 = vmatprep.subr.bf16.mxu0 %v801_v28 }
  0x21   :  { %755 = vmatprep.subr.bf16.mxu1 %v825_v1 }
  0x22   :  { %268 = vmatmul.mubr.bf16.vlgmr.msra.gmra.mrb[0].mxu0 %v29_v34 }
  0x23   :  { %752 = vmatmul.mubr.bf16.vlgmr.msra.gmra.mrb[0].mxu1 %v35_v37  ;;  %705 = vmatpush3.bf16.msra.mxu0 %v803_v30 }
  0x24   :  { %756 = vmatpush3.bf16.msra.mxu1 %v802_v29  ;;  %706 = vmatprep.subr.bf16.mxu0 %v804_v36 }
  0x25   :  { %757 = vmatprep.subr.bf16.mxu1 %v825_v1  ;;  %771 = vmatprep.mubr.msk.bf16.mxu1 %vm826_vm0, %v825_v1 }
  0x27   :  { %707 = vmatpush3.bf16.msra.mxu0 %v806_v38 }
  0x28   :  { %758 = vmatpush3.bf16.msra.mxu1 %v805_v39  ;;  %708 = vmatprep.subr.bf16.mxu0 %v807_v40 }
  0x29   :  { %759 = vmatprep.subr.bf16.mxu1 %v825_v1 }
  0x2b   :  { %709 = vmatpush3.bf16.msra.mxu0 %v809_v42 }
  0x2c   :  { %760 = vmatpush3.bf16.msra.mxu1 %v808_v41  ;;  %710 = vmatprep.subr.bf16.mxu0 %v810_v43 }
  0x2d   :  { %761 = vmatprep.subr.bf16.mxu1 %v825_v1 }
  0x2f   :  { %711 = vmatpush3.bf16.msra.mxu0 %v812_v45 }
  0x30   :  { %762 = vmatpush3.bf16.msra.mxu1 %v811_v44  ;;  %712 = vmatprep.subr.bf16.mxu0 %v813_v46 }
  0x31   :  { %763 = vmatprep.subr.bf16.mxu1 %v825_v1 }
  0x33   :  { %713 = vmatpush3.bf16.msra.mxu0 %v815_v48 }
  0x34   :  { %764 = vmatpush3.bf16.msra.mxu1 %v814_v47  ;;  %714 = vmatprep.subr.bf16.mxu0 %v816_v49 }
  0x35   :  { %765 = vmatprep.subr.bf16.mxu1 %v825_v1 }
  0x37   :  { %715 = vmatpush3.bf16.msra.mxu0 %v818_v51 }
  0x38   :  { %766 = vmatpush3.bf16.msra.mxu1 %v817_v50  ;;  %716 = vmatprep.subr.bf16.mxu0 %v819_v52 }
  0x39   :  { %767 = vmatprep.subr.bf16.mxu1 %v825_v1 }
  0x3b   :  { %717 = vmatpush3.bf16.msra.mxu0 %v821_v54 }
  0x3c   :  { %768 = vmatpush3.bf16.msra.mxu1 %v820_v53  ;;  %718 = vmatprep.subr.bf16.mxu0 %v822_v55 }
  0x3d   :  { %769 = vmatprep.subr.bf16.mxu1 %v825_v1 }
  0x3f   :  { %719 = vmatpush3.bf16.msra.mxu0 %v824_v57 }
  0x40   :  { %770 = vmatpush3.bf16.msra.mxu1 %v823_v56 }
  0xf5   :  { %v689_v58 = vpop.f32.mrb[0].mxu0 }
  0xf6   :  { %v690_v59 = vpop.f32.mrb[1].mxu0  ;;  %v310_v61 = vpop.f32.mrb[0].mxu1 }
  0xf7   :  { %v691_v62 = vadd.f32 %v690_v59, %v689_v58  ;;  %v692_v63 = vpop.f32.mrb[2].mxu0  ;;  %v753_v0 = vpop.f32.mrb[1].mxu1 }
  0xf8   :  { %v693_v2 = vpop.f32.mrb[3].mxu0  ;;  %v313_v3 = vpop.f32.mrb[2].mxu1 }
  0xf9   :  { %v270_v4 = vadd.f32 %v691_v62, %v623_v60  ;;  %v694_v5 = vadd.f32 %v693_v2, %v692_v63  ;;  %v754_v6 = vpop.f32.mrb[3].mxu1 }
  0xfb   :  { %v311_v7 = vadd.f32 %v310_v61, %v270_v4  ;;  %v273_v1 = vadd.f32 %v694_v5, %v623_v60 }
  0xfd   :  { %v317_v8 = vmax.f32 %v311_v7, 0.0  ;;  %v314_v9 = vadd.f32 %v313_v3, %v273_v1 }
  0xff   :  { %319 = vst [vmem:[#allocation2 + $0x1] sm:$0xff] %v317_v8  ;;  %v318_v10 = vmax.f32 %v314_v9, 0.0 }
 0x101   :  { %320 = vst [vmem:[#allocation2 + $0x9] sm:$0xff] %v318_v10  ;;  %v326_v11 = vpack.c.bf16 %v318_v10, %v317_v8 }
 0x103   :  { %561 = vmatprep.mubr.bf16.mxu0 %v326_v11 }
 0x106   :  { %v321_v12 = vld [vmem:[#allocation2] sm:$0xff] }
 0x108   :  { %v327_v13 = vld [vmem:[#allocation2 + $0x2] sm:$0xff]  ;;  %v328_v14 = vld [vmem:[#allocation2 + $0xa] sm:$0xff] }
 0x109   :  { %v322_v15 = vld [vmem:[#allocation2 + $0x8] sm:$0xff]  ;;  %v329_v16 = vpack.c.bf16 %v328_v14, %v327_v13 }
 0x10a   :  { %v323_v17 = vpack.c.bf16 %v322_v15, %v321_v12 }
 0x10b   :  { %772 = vmatmul.mubr.bf16.vlgmr.msra.gmra.mrb[4].mxu1 %v329_v16 }
 0x10c   :  { %562 = vmatmul.mubr.bf16.vlgmr.msra.gmra.mrb[4].mxu0 %v323_v17 }
 0x1de   :  { %v604_v18 = vpop.f32.mrb[4].mxu1 }
 0x1df   :  { %v720_v19 = vpop.f32.mrb[4].mxu0  ;;  %v773_v20 = vpop.f32.mrb[5].mxu1 }
 0x1e0   :  { %v721_v24 = vpop.f32.mrb[5].mxu0  ;;  %v607_v26 = vpop.f32.mrb[6].mxu1 }
 0x1e1   :  { %v722_v25 = vadd.f32 %v721_v24, %v720_v19  ;;  %v723_v27 = vpop.f32.mrb[6].mxu0  ;;  %v774_v28 = vpop.f32.mrb[7].mxu1 }
 0x1e2   :  { %v724_v29 = vpop.f32.mrb[7].mxu0 }
 0x1e3   :  { %v564_v30 = vadd.f32 %v722_v25, %v648_v21  ;;  %v725_v31 = vadd.f32 %v724_v29, %v723_v27 }
 0x1e5   :  { %v605_v32 = vadd.f32 %v604_v18, %v564_v30  ;;  %v567_v33 = vadd.f32 %v725_v31, %v648_v21 }
 0x1e7   :  { %v613_v34 = vadd.f32 %v605_v32, %v933_v22  ;;  %v608_v35 = vadd.f32 %v607_v26, %v567_v33 }
 0x1e9   :  { %v615_v36 = vmax.f32 %v613_v34, 0.0  ;;  %v614_v37 = vadd.f32 %v608_v35, %v938_v23 }
 0x1eb   :  { %617 = vst [vmem:[%s1056_s5] sm:$0xff] %v615_v36  ;;  %v616_v38 = vmax.f32 %v614_v37, 0.0 }
 0x1ed   :  { %618 = vst [vmem:[%s1056_s5 + $0x8] sm:$0xff] %v616_v38 }

</bundles_post_ra>
